<compile_context>
chip_gen: v7x
topology: tpu7x:2x2x1
jax: 0.10.0
libtpu: 0.0.40
codegen_flags: <defaults>
</compile_context>

<pallas_src>
import functools

import jax
import jax.numpy as jnp
from jax.experimental import pallas as pl
from jax.experimental.pallas import tpu as pltpu


def _mse_partial_kernel(pred_ref, label_ref, out_ref, *,
                        rows, row_tile, acc_rows,
                        steps_per_part, first_edge_block, needs_mask):
    """Accumulate sum((pred - label)^2) of this stream into out_ref."""
    p = pl.program_id(0)            # partial-sum stream ("parallel" axis)
    s = pl.program_id(1)            # streaming / reduction axis ("arbitrary")

    @pl.when(s == 0)
    def _():
        out_ref[...] = jnp.zeros_like(out_ref)

    lane = out_ref.shape[-1]
    block_idx = p * steps_per_part + s        # unclamped logical block index

    def accumulate(masked):
        d = pred_ref[...].astype(jnp.float32) - label_ref[...].astype(jnp.float32)
        sq = d * d
        if masked:
            # Zero rows past the end of the real data: covers both the ragged
            # last block and fully-duplicated clamped blocks of the last
            # stream (their row ids start at >= rows).
            row_ids = (block_idx * row_tile
                       + jax.lax.broadcasted_iota(jnp.int32, sq.shape, 0))
            sq = jnp.where(row_ids < rows, sq, 0.0)
        if acc_rows == 1:
            contrib = sq.sum(axis=0, keepdims=True)
        else:
            # Layout-preserving reshape: pure VPU adds in steady state.
            contrib = sq.reshape(row_tile // acc_rows, acc_rows, lane).sum(axis=0)
        out_ref[...] += contrib.reshape(out_ref.shape)

    if needs_mask:
        # Only edge blocks pay the iota/cmp/select cost; steady-state steps
        # take the unmasked branch.
        is_steady = block_idx < first_edge_block

        @pl.when(is_steady)
        def _():
            accumulate(False)

        @pl.when(jnp.logical_not(is_steady))
        def _():
            accumulate(True)
    else:
        accumulate(False)


def _device_kind():
    try:
        return str(getattr(jax.devices()[0], "device_kind", "")).lower()
    except Exception:
        return ""


def seq_loss(pred, label, *, target_block_bytes=None, num_parts=None):
    """MSE loss with mean reduction (== torch.nn.MSELoss()(pred, label))."""
    assert pred.shape == label.shape, "pred/label shape mismatch"
    total = int(pred.size)
    itemsize = jnp.dtype(pred.dtype).itemsize

    kind = _device_kind()
    is_v7x = "v7" in kind
    if target_block_bytes is None:
        # Bigger blocks on v7x: 3.2 TB/s HBM makes per-step overhead relatively
        # more expensive; 8 MiB blocks keep it <~10% while fitting 64 MiB VMEM.
        target_block_bytes = (8 << 20) if is_v7x else (4 << 20)
    if num_parts is None:
        # Two partial-sum streams only where a second TensorCore exists.
        # TODO(synk): if profiling shows "parallel" does not shard across the
        # two v7x TCs, switch this axis to an explicit core split.
        num_parts = 2 if is_v7x else 1

    # ---- Lane-dense view: zero-copy whenever total is a multiple of 128 ----
    pf = pred.reshape(-1)
    lf = label.reshape(-1)
    lane = next((l for l in (512, 256, 128) if total % l == 0), 512)
    rows = total // lane
    rem = total - rows * lane

    if rows == 0:
        # Sub-vreg input: nothing for the vector units to stream; plain JAX.
        d = pf.astype(jnp.float32) - lf.astype(jnp.float32)
        return jnp.sum(d * d) / total

    if rem == 0:
        p2 = pf.reshape(rows, lane)           # free reshape, no copy
        l2 = lf.reshape(rows, lane)
    else:
        # Rare path (total % 128 != 0): prefix slice + tiny wrapper tail-sum.
        # TODO(synk): the prefix slice may still copy in XLA; a manual-DMA
        # (memory_space=pl.ANY) tail handler would avoid it if it matters.
        p2 = jax.lax.slice(pf, (0,), (rows * lane,)).reshape(rows, lane)
        l2 = jax.lax.slice(lf, (0,), (rows * lane,)).reshape(rows, lane)

    # ---- Block sizing ----
    # Multiple of 32 rows (legal sublane tiling for f32/bf16/fp8) unless a
    # single full-extent block covers everything (always legal).
    row_tile_cap = max(32, (target_block_bytes // (lane * itemsize)) // 32 * 32)
    if rows <= row_tile_cap:
        row_tile = rows
    else:
        row_tile = int(row_tile_cap)
    acc_rows = 8 if row_tile % 8 == 0 else 1

    num_blocks = int(pl.cdiv(rows, row_tile))
    if num_blocks < 2:
        num_parts = 1
    steps_per_part = int(pl.cdiv(num_blocks, num_parts))

    ragged_last = (num_blocks * row_tile != rows)
    dup_steps = (num_parts * steps_per_part != num_blocks)
    needs_mask = ragged_last or dup_steps
    first_edge_block = num_blocks - 1 if ragged_last else num_blocks

    def in_map(p, s):
        # Clamp so any duplicated trailing step of the last stream re-reads a
        # valid block (fully masked in-kernel) instead of DMA-ing OOB.
        return (jnp.minimum(p * steps_per_part + s, num_blocks - 1), 0)

    kernel = functools.partial(
        _mse_partial_kernel,
        rows=rows, row_tile=row_tile, acc_rows=acc_rows,
        steps_per_part=steps_per_part,
        first_edge_block=first_edge_block, needs_mask=needs_mask)

    # 2 inputs x 2 pipeline buffers + resident output block + headroom.
    block_bytes = row_tile * lane * itemsize
    out_bytes = acc_rows * lane * 4
    vmem_need = 4 * block_bytes + 2 * out_bytes + (4 << 20)
    vmem_limit = int(min(max(vmem_need, 32 << 20), 56 << 20))

    partials = pl.pallas_call(
        kernel,
        out_shape=jax.ShapeDtypeStruct((num_parts, acc_rows, lane), jnp.float32),
        grid_spec=pltpu.PrefetchScalarGridSpec(
            num_scalar_prefetch=0,
            grid=(num_parts, steps_per_part),
            in_specs=[
                pl.BlockSpec((row_tile, lane), in_map),
                pl.BlockSpec((row_tile, lane), in_map),
            ],
            out_specs=pl.BlockSpec((1, acc_rows, lane), lambda p, s: (p, 0, 0)),
        ),
        compiler_params=pltpu.CompilerParams(
            dimension_semantics=("parallel", "arbitrary"),
            vmem_limit_bytes=vmem_limit,
        ),
    )(p2, l2)

    # Final tiny reduce + mean in plain XLA.
    ksum = jnp.sum(partials)
    if rem:
        tp = jax.lax.slice(pf, (rows * lane,), (total,)).astype(jnp.float32)
        tl = jax.lax.slice(lf, (rows * lane,), (total,)).astype(jnp.float32)
        ksum = ksum + jnp.sum((tp - tl) ** 2)
    return ksum / total


if __name__ == "__main__":
    key = jax.random.PRNGKey(0)
    k_pred, k_label = jax.random.split(key)

    # SeqLoss forward takes (pred, label); batch=2, seq=8, hidden=32.
    pred = jax.random.normal(k_pred, (2, 8, 32), dtype=jnp.float32)
    label = jax.random.normal(k_label, (2, 8, 32), dtype=jnp.float32)

    loss = seq_loss(pred, label)
    jax.block_until_ready(loss)
    ref = jnp.mean((pred - label) ** 2)
    assert jnp.allclose(loss, ref, rtol=1e-6, atol=1e-6), (loss, ref)

    # Second small check exercising the multi-block (and, on v7x, the
    # duplicated/masked edge-block) path via an artificially small block size.
    k2p, k2l = jax.random.split(jax.random.PRNGKey(1))
    pred2 = jax.random.normal(k2p, (4, 40, 512), dtype=jnp.float32)
    label2 = jax.random.normal(k2l, (4, 40, 512), dtype=jnp.float32)
    loss2 = seq_loss(pred2, label2, target_block_bytes=64 * 1024)
    jax.block_until_ready(loss2)
    ref2 = jnp.mean((pred2 - label2) ** 2)
    assert jnp.allclose(loss2, ref2, rtol=1e-5, atol=1e-6), (loss2, ref2)

    print("KERNEL_OK")
</pallas_src>

<mosaic_0001>
module attributes {stable_mosaic.version = 11 : i64} {
  func.func @_mse_partial_kernel(%arg0: i32, %arg1: i32, %arg2: memref<1x512xf32, #tpu.memory_space<vmem>>, %arg3: memref<1x512xf32, #tpu.memory_space<vmem>>, %arg4: memref<1x1x512xf32, #tpu.memory_space<vmem>>) attributes {dimension_semantics = [#tpu.dimension_semantics<parallel>, #tpu.dimension_semantics<arbitrary>], iteration_bounds = array<i64: 1, 1>, scalar_prefetch = 0 : i64, scratch_operands = 0 : i64, tpu.core_type = #tpu.core_type<tc>, window_params = [{transform_indices = @transform_0, window_bounds = array<i64: 1, 512>}, {transform_indices = @transform_1, window_bounds = array<i64: 1, 512>}, {transform_indices = @transform_2, window_bounds = array<i64: 1, 1, 512>}]} {
    %c0_i32 = arith.constant 0 : i32
    %0 = arith.cmpi eq, %arg1, %c0_i32 : i32
    %1 = arith.extui %0 : i1 to i32
    %c0_i32_0 = arith.constant 0 : i32
    %2 = arith.cmpi ne, %1, %c0_i32_0 : i32
    scf.if %2 {
      %cst_10 = arith.constant 0.000000e+00 : f32
      %13 = vector.broadcast %cst_10 : f32 to vector<1x1x512xf32>
      %c0_11 = arith.constant 0 : index
      %c0_12 = arith.constant 0 : index
      %c0_13 = arith.constant 0 : index
      %14 = vector.load %arg4[%c0_11, %c0_12, %c0_13] : memref<1x1x512xf32, #tpu.memory_space<vmem>>, vector<1x1x512xf32>
      tpu.vector_store %arg4[%c0_11, %c0_12, %c0_13], %13 {strides = array<i32>} : memref<1x1x512xf32, #tpu.memory_space<vmem>>, vector<1x1x512xf32>,
    } else {
    }
    %c0 = arith.constant 0 : index
    %c0_1 = arith.constant 0 : index
    %3 = vector.load %arg2[%c0, %c0_1] : memref<1x512xf32, #tpu.memory_space<vmem>>, vector<1x512xf32>
    %c0_2 = arith.constant 0 : index
    %c0_3 = arith.constant 0 : index
    %4 = vector.load %arg3[%c0_2, %c0_3] : memref<1x512xf32, #tpu.memory_space<vmem>>, vector<1x512xf32>
    %5 = arith.subf %3, %4 : vector<1x512xf32>
    %6 = arith.mulf %5, %5 : vector<1x512xf32>
    %cst = arith.constant dense<0.000000e+00> : vector<512xf32>
    %7 = vector.multi_reduction <add>, %6, %cst [0] : vector<1x512xf32> to vector<512xf32>
    %8 = vector.shape_cast %7 : vector<512xf32> to vector<1x512xf32>
    %c0_4 = arith.constant 0 : index
    %c0_5 = arith.constant 0 : index
    %c0_6 = arith.constant 0 : index
    %9 = vector.load %arg4[%c0_4, %c0_5, %c0_6] : memref<1x1x512xf32, #tpu.memory_space<vmem>>, vector<1x1x512xf32>
    %10 = vector.shape_cast %8 : vector<1x512xf32> to vector<1x1x512xf32>
    %11 = arith.addf %9, %10 : vector<1x1x512xf32>
    %c0_7 = arith.constant 0 : index
    %c0_8 = arith.constant 0 : index
    %c0_9 = arith.constant 0 : index
    %12 = vector.load %arg4[%c0_7, %c0_8, %c0_9] : memref<1x1x512xf32, #tpu.memory_space<vmem>>, vector<1x1x512xf32>
    tpu.vector_store %arg4[%c0_7, %c0_8, %c0_9], %11 {strides = array<i32>} : memref<1x1x512xf32, #tpu.memory_space<vmem>>, vector<1x1x512xf32>,
    return
  }
  func.func @transform_0(%arg0: i32, %arg1: i32) -> (i32, i32) {
    %c1_i32 = arith.constant 1 : i32
    %0 = arith.muli %arg0, %c1_i32 : i32
    %1 = arith.addi %0, %arg1 : i32
    %c0_i32 = arith.constant 0 : i32
    %2 = arith.minsi %1, %c0_i32 : i32
    %c0_i32_0 = arith.constant 0 : i32
    %c0_i32_1 = arith.constant 0 : i32
    return %2, %c0_i32_0 : i32, i32
  }
  func.func @transform_1(%arg0: i32, %arg1: i32) -> (i32, i32) {
    %c1_i32 = arith.constant 1 : i32
    %0 = arith.muli %arg0, %c1_i32 : i32
    %1 = arith.addi %0, %arg1 : i32
    %c0_i32 = arith.constant 0 : i32
    %2 = arith.minsi %1, %c0_i32 : i32
    %c0_i32_0 = arith.constant 0 : i32
    %c0_i32_1 = arith.constant 0 : i32
    return %2, %c0_i32_0 : i32, i32
  }
  func.func @transform_2(%arg0: i32, %arg1: i32) -> (i32, i32, i32) {
    %c0_i32 = arith.constant 0 : i32
    %c0_i32_0 = arith.constant 0 : i32
    %c0_i32_1 = arith.constant 0 : i32
    return %arg0, %c0_i32, %c0_i32_0 : i32, i32, i32
  }
}

</mosaic_0001>

<bundles_post_ra>
// kernel: tpu_custom_call.1
= control target key start
LH: loop header
LB: loop body
LE: loop exit
PB: predicated region body
PF: predicated region fallthrough
CT: control target
= control target key end

     0   :  { %7 = vsyncpa [#allocation3], 0  ;;  %s226_s0 = inlined_call_operand.hbm [shape: f32[1,512], index: 0, kind: input, shape index: {}]   ;;  %s227_s1 = inlined_call_operand.hbm [shape: f32[1,512], index: 1, kind: input, shape index: {}]   ;;  %s228_s2 = inlined_call_operand.hbm [shape: f32[1,1,512], index: 2, kind: output, shape index: {}]  }
   0x1   :  { %8 = vsyncpa [#allocation6], 0 }
   0x2   :  { %9 = vsyncpa [#allocation4], 0  ;;  %s171_s9 = smov [#allocation2]   ;;  %s172_s11 = smov [#allocation5]  }
   0x3   :  { %s22_s10 = sshll.u32 %s171_s9, 4  ;;  %s38_s12 = sshll.u32 %s172_s11, 4  ;;  %s23_s10 = int_to_ptr.vmem [resolvable:$true] %s22_s10  ;;  %s39_s12 = int_to_ptr.vmem [resolvable:$true] %s38_s12 }
   0x4   :  { %s99_s15 = scalar_lea.hbm %s226_s0, 64 }
   0x5   :  { %p100_p0 = scmp.ne.s32.totalorder %s226_s0, %s99_s15  ;;  %p103_p1 = scmp.lt.u32.totalorder %s99_s15, %s226_s0 }
   0x7   :  { %p105_p2 = pnand %p103_p1, %p100_p0 }
   0x9   :  { %108 = shalt.err (!%p105_p2)
}
   0xa   :  { %s109_s20 = scalar_lea.vmem %s23_s10, 64  ;;  %p114_p4 = scmp.lt.s32.totalorder %s23_s10, %s23_s10 }
   0xb   :  { %p110_p3 = scmp.ne.s32.totalorder %s23_s10, %s109_s20  ;;  %p115_p5 = scmp.lt.s32.totalorder %s109_s20, %s109_s20 }
   0xd   :  { %p116_p6 = por %p115_p5, %p114_p4 }
   0xf   :  { %p117_p7 = pnand %p116_p6, %p110_p3 }
  0x11   :  { %120 = shalt.err (!%p117_p7)
}
  0x12   :  { %25 = dma.hbm_to_vmem [thread:$0]  %s226_s0, 64, %s23_s10, [#allocation3]  }
  0x13   :  { %s121_s25 = scalar_lea.hbm %s227_s1, 64 }
  0x14   :  { %p122_p8 = scmp.ne.s32.totalorder %s227_s1, %s121_s25  ;;  %p125_p9 = scmp.lt.u32.totalorder %s121_s25, %s227_s1 }
  0x16   :  { %p127_p10 = pnand %p125_p9, %p122_p8 }
  0x18   :  { %130 = shalt.err (!%p127_p10)
}
  0x19   :  { %s131_s30 = scalar_lea.vmem %s39_s12, 64  ;;  %p136_p12 = scmp.lt.s32.totalorder %s39_s12, %s39_s12 }
  0x1a   :  { %p132_p11 = scmp.ne.s32.totalorder %s39_s12, %s131_s30  ;;  %p137_p13 = scmp.lt.s32.totalorder %s131_s30, %s131_s30 }
  0x1c   :  { %p138_p0 = por %p137_p13, %p136_p12 }
  0x1e   :  { %p139_p1 = pnand %p138_p0, %p132_p11 }
  0x20   :  { %142 = shalt.err (!%p139_p1)
}
  0x21   :  { %41 = dma.hbm_to_vmem [thread:$0]  %s227_s1, 64, %s39_s12, [#allocation6]  }
  0x22   :  { %165 = dma.done.wait [#allocation3], 64  }
  0x23   :  { %166 = vsyncadd [#allocation3], 4294967232 }
  0x24   :  { %167 = dma.done.wait [#allocation6], 64  }
  0x25   :  { %168 = vsyncadd [#allocation6], 4294967232  ;;  %v58_v0 = vlaneseq  ;;  %v173_v1 = vmov 0.0   ;;  %v63_v2 = vld [vmem:[#allocation2] sm:$0xf]  ;;  %s174_s4 = smov [#allocation7]  }
  0x26   :  { %v64_v3 = vld [vmem:[#allocation5] sm:$0xf]  ;;  %s81_s5 = sshll.u32 %s174_s4, 4  ;;  %s82_s5 = int_to_ptr.vmem [resolvable:$true] %s81_s5 }
  0x27   :  { %vm60_vm0 = vcmp.lt.s32.totalorder %v58_v0, 512  ;;  %v65_v4 = vsub.f32 %v63_v2, %v64_v3  ;;  %s143_s6 = scalar_lea.vmem %s82_s5, 64  ;;  %p148_p3 = scmp.lt.s32.totalorder %s82_s5, %s82_s5 }
  0x28   :  { %62 = vst.msk [vmem:[#allocation7] sm:$0xf] %vm60_vm0, %v173_v1  ;;  %p144_p2 = scmp.ne.s32.totalorder %s82_s5, %s143_s6  ;;  %p149_p4 = scmp.lt.s32.totalorder %s143_s6, %s143_s6 }
  0x29   :  { %v66_v5 = vmul.f32 %v65_v4, %v65_v4 }
  0x2a   :  { %p150_p5 = por %p149_p4, %p148_p3 }
  0x2c   :  { %p151_p6 = pnand %p150_p5, %p144_p2 }
  0x2f   :  { %v68_v6 = vld [vmem:[#allocation7] sm:$0xf] }
  0x30   :  { %v69_v7 = vadd.f32 %v68_v6, %v66_v5 }
  0x32   :  { %74 = vst.msk [vmem:[#allocation7] sm:$0xf] %vm60_vm0, %v69_v7 }
  0x33   :  { %154 = shalt.err (!%p151_p6)
}
  0x34   :  { %s155_s8 = scalar_lea.hbm %s228_s2, 64 }
  0x35   :  { %p156_p7 = scmp.ne.s32.totalorder %s228_s2, %s155_s8  ;;  %p159_p8 = scmp.lt.u32.totalorder %s155_s8, %s228_s2 }
  0x37   :  { %p161_p9 = pnand %p159_p8, %p156_p7 }
  0x39   :  { %164 = shalt.err (!%p161_p9)
}
  0x3a   :  { %84 = dma.vmem_to_hbm [thread:$0]  %s82_s5, 64, %s228_s2, [#allocation4]  }
  0x3b   :  { %169 = dma.done.wait [#allocation4], 64  }
  0x3c   :  { %170 = vsyncadd [#allocation4], 4294967232 }
  0x3d   :  { %88 = vsyncpa [#allocation3], 1 }
  0x3e   :  { %89 = vsyncpa [#allocation6], 1 }
  0x3f   :  { %90 = vsyncpa [#allocation4], 1 }

</bundles_post_ra>
